<compile_context>
chip_gen: v5e
topology: v5e:2x2
jax: 0.10.0
libtpu: 0.0.40
codegen_flags: <defaults>
</compile_context>

<pallas_src>
import numpy as np
import jax
import jax.numpy as jnp
from jax.experimental import pallas as pl
from jax.experimental.pallas import tpu as pltpu


# ----------------------------- filter / padding setup ------------------------

_BINOMIAL_ROWS = {
    1: [1.0],
    2: [1.0, 1.0],
    3: [1.0, 2.0, 1.0],
    4: [1.0, 3.0, 3.0, 1.0],
    5: [1.0, 4.0, 6.0, 4.0, 1.0],
    6: [1.0, 5.0, 10.0, 10.0, 5.0, 1.0],
    7: [1.0, 6.0, 15.0, 20.0, 15.0, 6.0, 1.0],
}


def _pad_index(p, n, pad_lo, pad_type):
    """Map a padded-coordinate p to an unpadded index (or None for zero-pad)."""
    j = p - pad_lo
    if 0 <= j < n:
        return j
    if pad_type in ('refl', 'reflect'):
        return -j if j < 0 else 2 * (n - 1) - j
    if pad_type in ('repl', 'replicate'):
        return 0 if j < 0 else n - 1
    if pad_type == 'zero':
        return None
    raise ValueError('Pad type [%s] not recognized' % pad_type)


def _blur_down_matrices(h, w, filt_size, stride, pad_off, pad_type, dtype):
    """Build padding-folded blur+subsample matrices A (Ho,H) and B (W,Wo)."""
    a = np.array(_BINOMIAL_ROWS[filt_size], dtype=np.float64)
    f = a / a.sum()
    pad_lo = int(1.0 * (filt_size - 1) / 2) + pad_off
    pad_hi = int(np.ceil(1.0 * (filt_size - 1) / 2)) + pad_off

    def folded(n):
        if pad_type in ('refl', 'reflect') and (pad_lo >= n or pad_hi >= n):
            raise ValueError('reflection padding size must be < input dim')
        n_out = (n + pad_lo + pad_hi - filt_size) // stride + 1
        m = np.zeros((n_out, n), dtype=np.float64)
        for o in range(n_out):
            for k in range(filt_size):
                j = _pad_index(o * stride + k, n, pad_lo, pad_type)
                if j is not None:
                    m[o, j] += f[k]
        return m, n_out

    A, ho = folded(h)        # (Ho, H)
    Bt, wo = folded(w)       # (Wo, W)
    return (jnp.asarray(A, dtype=dtype),
            jnp.asarray(Bt.T, dtype=dtype),   # (W, Wo)
            ho, wo)


# ----------------------------- VMEM / tiling helpers -------------------------

def _physical_vmem_bytes():
    """Per-TensorCore VMEM capacity; conservative fallback if query fails."""
    try:
        return int(pltpu.get_tpu_info().vmem_capacity_bytes)
    except Exception:
        return 64 << 20   # v7x per-TC size (most restrictive)


def _per_channel_bytes(h, w, ho, wo, itemsize):
    """Working-set bytes per folded (N*C) channel, including f32 temporaries."""
    return (2 * h * w * itemsize        # input block, double-buffered
            + 2 * ho * wo * itemsize    # output block, double-buffered
            + h * wo * 4                # t after first matmul (f32)
            + h * wo * itemsize         # relayout copy of t (native dtype)
            + ho * wo * 4)              # y before final cast (f32)


def _pick_channel_tile(nc, h, w, ho, wo, itemsize, budget_bytes):
    """Largest (N*C)-tile whose full working set fits the VMEM budget."""
    per = _per_channel_bytes(h, w, ho, wo, itemsize)
    if nc * per <= budget_bytes:
        return nc
    best_fitting = None
    for tc in range(nc - 1, 0, -1):
        if nc % tc or tc * per > budget_bytes:
            continue
        if (tc * h) % 8 == 0 and (tc * wo) % 128 == 0:
            return tc                      # aligned and within budget
        if best_fitting is None:
            best_fitting = tc              # largest unaligned tile that fits
    if best_fitting is not None:
        return best_fitting                # masked stores beat VMEM overflow
    return 1                               # worst case: one channel per step


# ------------------------------ Pallas kernel --------------------------------

def _blur_down_kernel(a_ref, b_ref, x_ref, o_ref):
    # a_ref: (Ho, H)        row blur + subsample (padding folded in)
    # b_ref: (W,  Wo)       col blur + subsample (padding folded in)
    # x_ref: (TC*H, W)      unpadded input slab (batch+channels folded in rows)
    # o_ref: (Ho, TC*Wo)    lane-dense output slab
    h = a_ref.shape[1]
    wo = b_ref.shape[1]
    tc = x_ref.shape[0] // h

    x = x_ref[...]                                                  # native dtype
    # Column blur + subsample: one big native-dtype MXU matmul, f32 accumulate.
    t = jnp.dot(x, b_ref[...], preferred_element_type=jnp.float32)  # (TC*H, Wo)
    # Cast back to the input dtype BEFORE the relayout so the transpose moves
    # half the bytes (bf16) and the second matmul stays on the single-pass
    # native MXU path.
    t = t.astype(x_ref.dtype)
    t = t.reshape(tc, h, wo)
    t = pltpu.einshape('chw->hcw', t)                                # (H, TC, Wo)
    t = t.reshape(h, tc * wo)                                        # (H, TC*Wo)
    # Row blur + subsample: (Ho, H) @ (H, TC*Wo), f32 accumulate.
    y = jnp.dot(a_ref[...], t, preferred_element_type=jnp.float32)   # (Ho, TC*Wo)
    o_ref[...] = y.astype(o_ref.dtype)


# ------------------------------ wrapper ---------------------------------------

def downsample(x, *, pad_type='reflect', filt_size=3, stride=2, pad_off=0):
    """JAX/Pallas equivalent of Downsample.forward. x is NCHW."""
    n, c, h, w = x.shape

    # PyTorch fast path: filt_size == 1 with no extra padding -> pure subsample.
    if filt_size == 1 and pad_off == 0:
        return x[:, :, ::stride, ::stride]

    # (filt_size == 1 with pad_off != 0 routes through the folded A/B path,
    # which reduces to the padded strided subsample.)
    A, B, ho, wo = _blur_down_matrices(h, w, filt_size, stride, pad_off,
                                       pad_type, x.dtype)
    itemsize = x.dtype.itemsize
    nc = n * c

    phys_vmem = _physical_vmem_bytes()
    # Generation-aware tile budget: larger on 128 MiB parts (v5e/v6e), tighter
    # on v7x's 64 MiB per-TensorCore VMEM.
    blk_budget = (24 << 20) if phys_vmem >= (96 << 20) else (8 << 20)
    tc = _pick_channel_tile(nc, h, w, ho, wo, itemsize, blk_budget)
    n_ct = nc // tc

    fixed = 2 * int(A.size + B.size) * itemsize           # A/B (double-buffered)
    need = fixed + tc * _per_channel_bytes(h, w, ho, wo, itemsize) + (4 << 20)
    vmem_limit = int(min(int(phys_vmem * 0.85), max(32 << 20, need)))

    flops = 2 * nc * h * w * wo + 2 * nc * ho * h * wo
    bytes_accessed = (x.size + nc * ho * wo + int(A.size + B.size)) * itemsize
    cost = pl.CostEstimate(flops=int(flops), transcendentals=0,
                           bytes_accessed=int(bytes_accessed))

    # Free row-major relabels: batch folded into the channel/row axis so the
    # kernel's first matmul operand is natively 2-D.
    x2 = x.reshape(nc * h, w)

    out = pl.pallas_call(
        _blur_down_kernel,
        out_shape=jax.ShapeDtypeStruct((ho, nc * wo), x.dtype),
        grid_spec=pltpu.PrefetchScalarGridSpec(
            num_scalar_prefetch=0,
            grid=(n_ct,),
            in_specs=[
                pl.BlockSpec((ho, h), lambda i: (0, 0)),
                pl.BlockSpec((w, wo), lambda i: (0, 0)),
                pl.BlockSpec((tc * h, w), lambda i: (i, 0)),
            ],
            out_specs=pl.BlockSpec((ho, tc * wo), lambda i: (0, i)),
        ),
        compiler_params=pltpu.CompilerParams(
            dimension_semantics=("parallel",),
            vmem_limit_bytes=vmem_limit),
        cost_estimate=cost,
    )(A, B, x2)

    # Wrapper-side layout plumbing on the 4x-smaller output:
    # (Ho, N*C*Wo) -> (N, C, Ho, Wo).
    return out.reshape(ho, nc, wo).transpose(1, 0, 2).reshape(n, c, ho, wo)


# ------------------------------ plain-JAX reference ---------------------------

_PAD_MODE = {'refl': 'reflect', 'reflect': 'reflect',
             'repl': 'edge', 'replicate': 'edge',
             'zero': 'constant'}


def _ref_downsample(x, *, pad_type='reflect', filt_size=3, stride=2, pad_off=0):
    n, c, h, w = x.shape
    if filt_size == 1 and pad_off == 0:
        return x[:, :, ::stride, ::stride]
    pad_l = int(1.0 * (filt_size - 1) / 2) + pad_off
    pad_r = int(np.ceil(1.0 * (filt_size - 1) / 2)) + pad_off
    xp = jnp.pad(x, ((0, 0), (0, 0), (pad_l, pad_r), (pad_l, pad_r)),
                 mode=_PAD_MODE[pad_type])
    if filt_size == 1:
        return xp[:, :, ::stride, ::stride]
    a = np.array(_BINOMIAL_ROWS[filt_size])
    filt2d = a[:, None] * a[None, :]
    filt2d = jnp.asarray(filt2d / filt2d.sum(), dtype=x.dtype)
    wgt = jnp.broadcast_to(filt2d[None, None], (c, 1, filt_size, filt_size))
    return jax.lax.conv_general_dilated(
        xp, wgt, window_strides=(stride, stride), padding='VALID',
        dimension_numbers=('NCHW', 'OIHW', 'NCHW'), feature_group_count=c)


# ------------------------------ main -------------------------------------------

if __name__ == "__main__":
    key = jax.random.PRNGKey(0)
    # Downsample(pad_type='reflect', filt_size=3, stride=2, channels=4)
    x = jax.random.normal(key, (2, 4, 16, 16), dtype=jnp.float32)

    out = jax.block_until_ready(
        downsample(x, pad_type='reflect', filt_size=3, stride=2, pad_off=0))
    ref = jax.block_until_ready(
        _ref_downsample(x, pad_type='reflect', filt_size=3, stride=2, pad_off=0))
    assert out.shape == (2, 4, 8, 8), out.shape
    assert jnp.allclose(out, ref, atol=1e-5, rtol=1e-5), \
        float(jnp.max(jnp.abs(out - ref)))

    # second config: even filter size + replicate padding
    out2 = jax.block_until_ready(
        downsample(x, pad_type='replicate', filt_size=4, stride=2, pad_off=0))
    ref2 = jax.block_until_ready(
        _ref_downsample(x, pad_type='replicate', filt_size=4, stride=2, pad_off=0))
    assert out2.shape == ref2.shape, (out2.shape, ref2.shape)
    assert jnp.allclose(out2, ref2, atol=1e-5, rtol=1e-5), \
        float(jnp.max(jnp.abs(out2 - ref2)))

    print("KERNEL_OK")
</pallas_src>

<mosaic_0001>
module attributes {stable_mosaic.version = 11 : i64} {
  func.func @_blur_down_kernel(%arg0: i32, %arg1: memref<8x16xf32, #tpu.memory_space<vmem>>, %arg2: memref<16x8xf32, #tpu.memory_space<vmem>>, %arg3: memref<128x16xf32, #tpu.memory_space<vmem>>, %arg4: memref<8x64xf32, #tpu.memory_space<vmem>>) attributes {dimension_semantics = [#tpu.dimension_semantics<parallel>], iteration_bounds = array<i64: 1>, scalar_prefetch = 0 : i64, scratch_operands = 0 : i64, tpu.core_type = #tpu.core_type<tc>, window_params = [{pipeline_mode = #tpu.pipeline_mode<synchronous>, transform_indices = @transform_0, window_bounds = array<i64: 8, 16>}, {pipeline_mode = #tpu.pipeline_mode<synchronous>, transform_indices = @transform_1, window_bounds = array<i64: 16, 8>}, {transform_indices = @transform_2, window_bounds = array<i64: 128, 16>}, {transform_indices = @transform_3, window_bounds = array<i64: 8, 64>}]} {
    %c0 = arith.constant 0 : index
    %c0_0 = arith.constant 0 : index
    %0 = vector.load %arg3[%c0, %c0_0] : memref<128x16xf32, #tpu.memory_space<vmem>>, vector<128x16xf32>
    %c0_1 = arith.constant 0 : index
    %c0_2 = arith.constant 0 : index
    %1 = vector.load %arg2[%c0_1, %c0_2] : memref<16x8xf32, #tpu.memory_space<vmem>>, vector<16x8xf32>
    %cst = arith.constant dense<0.000000e+00> : vector<128x8xf32>
    %2 = tpu.matmul %0, %1, %cst {dimension_numbers = #tpu.dot_dimension_numbers<[1], [0], [0], [1], [0, 0, 1, 1], [], []>} : vector<128x16xf32>, vector<16x8xf32>, vector<128x8xf32> -> vector<128x8xf32>
    %3 = vector.shape_cast %2 : vector<128x8xf32> to vector<8x16x8xf32>
    %4 = tpu.transpose %3, [1, 0, 2] : vector<8x16x8xf32> -> vector<16x8x8xf32>
    %5 = vector.shape_cast %4 : vector<16x8x8xf32> to vector<16x64xf32>
    %c0_3 = arith.constant 0 : index
    %c0_4 = arith.constant 0 : index
    %6 = vector.load %arg1[%c0_3, %c0_4] : memref<8x16xf32, #tpu.memory_space<vmem>>, vector<8x16xf32>
    %cst_5 = arith.constant dense<0.000000e+00> : vector<8x64xf32>
    %7 = tpu.matmul %6, %5, %cst_5 {dimension_numbers = #tpu.dot_dimension_numbers<[1], [0], [0], [1], [0, 0, 1, 1], [], []>} : vector<8x16xf32>, vector<16x64xf32>, vector<8x64xf32> -> vector<8x64xf32>
    %c0_6 = arith.constant 0 : index
    %c0_7 = arith.constant 0 : index
    %8 = vector.load %arg4[%c0_6, %c0_7] : memref<8x64xf32, #tpu.memory_space<vmem>>, vector<8x64xf32>
    tpu.vector_store %arg4[%c0_6, %c0_7], %7 {strides = array<i32>} : memref<8x64xf32, #tpu.memory_space<vmem>>, vector<8x64xf32>,
    return
  }
  func.func @transform_0(%arg0: i32) -> (i32, i32) {
    %c0_i32 = arith.constant 0 : i32
    %c0_i32_0 = arith.constant 0 : i32
    %c0_i32_1 = arith.constant 0 : i32
    return %c0_i32, %c0_i32_0 : i32, i32
  }
  func.func @transform_1(%arg0: i32) -> (i32, i32) {
    %c0_i32 = arith.constant 0 : i32
    %c0_i32_0 = arith.constant 0 : i32
    %c0_i32_1 = arith.constant 0 : i32
    return %c0_i32, %c0_i32_0 : i32, i32
  }
  func.func @transform_2(%arg0: i32) -> (i32, i32) {
    %c0_i32 = arith.constant 0 : i32
    %c0_i32_0 = arith.constant 0 : i32
    return %arg0, %c0_i32 : i32, i32
  }
  func.func @transform_3(%arg0: i32) -> (i32, i32) {
    %c0_i32 = arith.constant 0 : i32
    %c0_i32_0 = arith.constant 0 : i32
    return %c0_i32, %arg0 : i32, i32
  }
}

</mosaic_0001>

<bundles_post_ra>
// kernel: tpu_custom_call.1
= control target key start
LH: loop header
LB: loop body
LE: loop exit
PB: predicated region body
PF: predicated region fallthrough
CT: control target
= control target key end

     0   :  { %vm33_vm0 = vcmask 130048   ;;  %s1177_s0 = inlined_call_operand.vmem [shape: f32[8,16], index: 0, kind: input, shape index: {}]   ;;  %s1178_s1 = inlined_call_operand.vmem [shape: f32[16,8], index: 1, kind: input, shape index: {}]   ;;  %s1179_s2 = inlined_call_operand.vmem [shape: f32[128,16], index: 2, kind: input, shape index: {}]   ;;  %s1180_s3 = inlined_call_operand.hbm [shape: f32[8,64], index: 3, kind: output, shape index: {}]  }
   0x1   :  { %v32_v0 = vld [vmem:[%s1178_s1 + $0x8] sm:$0xff]  ;;  %v31_v1 = vld [vmem:[%s1178_s1] sm:$0xff]  ;;  %v21_v3 = vld [vmem:[%s1179_s2 + $0x30] sm:$0xff] }
   0x2   :  { %96 = vmatpush.msra.mxu0 %v32_v0  ;;  %732 = vmatpush.msra.mxu2 %v32_v0  ;;  %v15_v2 = vld [vmem:[%s1179_s2] sm:$0xff]  ;;  %v26_v4 = vld [vmem:[%s1179_s2 + $0x58] sm:$0xff]  ;;  %v20_v5 = vld [vmem:[%s1179_s2 + $0x28] sm:$0xff] }
   0x3   :  { %733 = vmatpush.msra.mxu3 %v32_v0  ;;  %731 = vmatpush.msra.mxu1 %v32_v0 }
   0x4   :  { %97 = vmatpush.msra.mxu0 %v31_v1  ;;  %735 = vmatpush.msra.mxu2 %v31_v1 }
   0x5   :  { %736 = vmatpush.msra.mxu3 %v31_v1  ;;  %714 = vmatmul.msk.f32.vlgmr.msra.gmra.mxu0 %vm33_vm0, %v15_v2 }
   0x6   :  { %720 = vmatmul.msk.f32.vlgmr.msra.gmra.mxu2 %vm33_vm0, %v21_v3  ;;  %725 = vmatmul.msk.f32.vlgmr.msra.gmra.mxu3 %vm33_vm0, %v26_v4 }
   0x7   :  { %734 = vmatpush.msra.mxu1 %v31_v1 }
   0x8   :  { %8 = vsyncpa [#allocation3], 0  ;;  %719 = vmatmul.msk.f32.vlgmr.msra.gmra.mxu1 %vm33_vm0, %v20_v5  ;;  %v16_v6 = vld [vmem:[%s1179_s2 + $0x8] sm:$0xff]  ;;  %v22_v7 = vld [vmem:[%s1179_s2 + $0x38] sm:$0xff]  ;;  %v808_v25 = vmov 1983009808  }
   0x9   :  { %v27_v8 = vld [vmem:[%s1179_s2 + $0x60] sm:$0xff]  ;;  %v17_v9 = vld [vmem:[%s1179_s2 + $0x10] sm:$0xff]  ;;  %v28_v11 = vld [vmem:[%s1179_s2 + $0x68] sm:$0xff]  ;;  %v153_v26 = vunpack.c.l.s4 %v808_v25  ;;  %vm148_vm1 = vcmask 1047556   ;;  %v809_v36 = vmov 1934713408  }
   0xa   :  { %v23_v10 = vld [vmem:[%s1179_s2 + $0x40] sm:$0xff]  ;;  %v18_v12 = vld [vmem:[%s1179_s2 + $0x18] sm:$0xff]  ;;  %v24_v13 = vld [vmem:[%s1179_s2 + $0x48] sm:$0xff]  ;;  %v201_v37 = vunpack.c.l.s4 %v809_v36  ;;  %s811_s20 = smov 40   ;;  %s812_s21 = smov 24   ;;  %vm652_vm2 = vcmask 64512  }
   0xb   :  { %v29_v14 = vld [vmem:[%s1179_s2 + $0x70] sm:$0xff]  ;;  %v19_v15 = vld [vmem:[%s1179_s2 + $0x20] sm:$0xff]  ;;  %v30_v17 = vld [vmem:[%s1179_s2 + $0x78] sm:$0xff]  ;;  %v912_v30 = vunpack.c.0.s8 %v153_v26  ;;  %s813_s1 = smov 16   ;;  %s814_s22 = smov 48   ;;  %vm657_vm3 = vcmask 195584  }
   0xc   :  { %v25_v16 = vld [vmem:[%s1179_s2 + $0x50] sm:$0xff]  ;;  %v920_v48 = vunpack.c.0.s8 %v201_v37  ;;  %s810_s2 = smov 8   ;;  %s815_s23 = smov 32   ;;  %vm660_vm4 = vcmask 261120   ;;  %vm663_vm5 = vcmask 326656   ;;  %vm666_vm6 = vcmask 392192  }
   0xd   :  { %715 = vmatmul.msk.f32.gmra.mxu0 %vm33_vm0, %v16_v6  ;;  %s816_s24 = smov 56   ;;  %vm669_vm7 = vcmask 457728   ;;  %s817_s27 = smov [#allocation2]   ;;  %vm696_vm8 = vcmask 523264  }
   0xe   :  { %721 = vmatmul.msk.f32.gmra.mxu2 %vm33_vm0, %v22_v7  ;;  %726 = vmatmul.msk.f32.gmra.mxu3 %vm33_vm0, %v27_v8  ;;  %s703_s28 = sshll.u32 %s817_s27, 4  ;;  %s705_s4 = sshll.u32 %s1180_s3, 4  ;;  %s704_s28 = int_to_ptr.vmem [resolvable:$true] %s703_s28  ;;  %s706_s4 = int_to_ptr.hbm [resolvable:$true] %s705_s4 }
  0x15   :  { %716 = vmatmul.msk.f32.gmra.mxu0 %vm33_vm0, %v17_v9 }
  0x16   :  { %722 = vmatmul.msk.f32.gmra.mxu2 %vm33_vm0, %v23_v10  ;;  %727 = vmatmul.msk.f32.gmra.mxu3 %vm33_vm0, %v28_v11 }
  0x1d   :  { %717 = vmatmul.msk.f32.gmra.mxu0 %vm33_vm0, %v18_v12 }
  0x1e   :  { %723 = vmatmul.msk.f32.gmra.mxu2 %vm33_vm0, %v24_v13  ;;  %728 = vmatmul.msk.f32.gmra.mxu3 %vm33_vm0, %v29_v14 }
  0x25   :  { %718 = vmatmul.msk.f32.gmra.mxu0 %vm33_vm0, %v19_v15 }
  0x26   :  { %724 = vmatmul.msk.f32.gmra.mxu2 %vm33_vm0, %v25_v16  ;;  %729 = vmatmul.msk.f32.gmra.mxu3 %vm33_vm0, %v30_v17 }
  0x82   :  { %v908_v18 = vpop.f32.mrf.mxu0 }
  0x83   :  { %v150_v60 = vrot.slane %v908_v18, 4 }
  0x85   :  { %v114_v22 = vpop.f32.mrf.mxu1 }
  0x86   :  { %v260_v29 = vrot.slane %v114_v22, 4 }
  0x89   :  { %v117_v19 = vpop.f32.mrf.mxu2  ;;  %v910_v20 = vpop.f32.mrf.mxu3 }
  0x8a   :  { %v102_v21 = vpop.f32.mrf.mxu0  ;;  %v160_v45 = vrot.slane %v117_v19, 4  ;;  %v298_v7 = vrot.slane %v910_v20, 4 }
  0x8b   :  { %v262_v28 = vrot.slane %v102_v21, 4  ;;  %v261_v31 = vsel %vm148_vm1, %v260_v29, %v102_v21 }
  0x8c   :  { %v267_v38 = vperm.slane %v261_v31, %v912_v30 }
  0x8d   :  { %v263_v32 = vsel %vm148_vm1, %v114_v22, %v262_v28 }
  0x8e   :  { %v271_v39 = vperm.slane %v263_v32, %v912_v30  ;;  %v310_v50 = vrot.slane %v267_v38, 4 }
  0x90   :  { %v322_v54 = vrot.slane %v271_v39, 4 }
  0x91   :  { %v120_v23 = vpop.f32.mrf.mxu2  ;;  %v135_v24 = vpop.f32.mrf.mxu3 }
  0x92   :  { %v105_v27 = vpop.f32.mrf.mxu0  ;;  %v272_v33 = vrot.slane %v120_v23, 4  ;;  %v172_v47 = vrot.slane %v135_v24, 4 }
  0x93   :  { %v162_v41 = vrot.slane %v105_v27, 4  ;;  %v161_v51 = vsel %vm148_vm1, %v160_v45, %v105_v27 }
  0x94   :  { %v167_v61 = vperm.slane %v161_v51, %v912_v30 }
  0x95   :  { %v163_v55 = vsel %vm148_vm1, %v117_v19, %v162_v41 }
  0x96   :  { %v171_v2 = vperm.slane %v163_v55, %v912_v30  ;;  %v196_v15 = vrot.slane %v167_v61, 4 }
  0x98   :  { %v208_v21 = vrot.slane %v171_v2, 4 }
  0x99   :  { %v123_v34 = vpop.f32.mrf.mxu2  ;;  %v138_v35 = vpop.f32.mrf.mxu3 }
  0x9a   :  { %v108_v40 = vpop.f32.mrf.mxu0  ;;  %v174_v42 = vrot.slane %v123_v34, 4  ;;  %v173_v56 = vsel %vm148_vm1, %v172_v47, %v123_v34  ;;  %v284_v8 = vrot.slane %v138_v35, 4 }
  0x9b   :  { %v273_v43 = vsel %vm148_vm1, %v272_v33, %v108_v40  ;;  %v274_v44 = vrot.slane %v108_v40, 4  ;;  %v179_v3 = vperm.slane %v173_v56, %v912_v30 }
  0x9c   :  { %v279_v46 = vperm.slane %v273_v43, %v912_v30  ;;  %v175_v57 = vsel %vm148_vm1, %v135_v24, %v174_v42 }
  0x9d   :  { %v275_v49 = vsel %vm148_vm1, %v120_v23, %v274_v44  ;;  %v936_v4 = vperm.slane %v175_v57, %v912_v30  ;;  %v222_v22 = vrot.slane %v179_v3, 4 }
  0x9e   :  { %v283_v52 = vperm.slane %v275_v49, %v912_v30  ;;  %v308_v53 = vrot.slane %v279_v46, 4  ;;  %v311_v58 = vsel %vm148_vm1, %v279_v46, %v310_v50 }
  0x9f   :  { %v941_v9 = vperm.slane %v311_v58, %v920_v48  ;;  %v234_v23 = vrot.slane %v936_v4, 4 }
  0xa0   :  { %v320_v59 = vrot.slane %v283_v52, 4  ;;  %v309_v62 = vsel %vm148_vm1, %v308_v53, %v267_v38  ;;  %v323_v63 = vsel %vm148_vm1, %v283_v52, %v322_v54 }
  0xa1   :  { %v126_v0 = vpop.f32.mrf.mxu2  ;;  %v141_v1 = vpop.f32.mrf.mxu3  ;;  %v944_v11 = vperm.slane %v309_v62, %v920_v48  ;;  %v947_v12 = vperm.slane %v323_v63, %v920_v48  ;;  %v362_v25 = vrot.slane %v941_v9, 4 }
  0xa2   :  { %v321_v5 = vsel %vm148_vm1, %v320_v59, %v271_v39  ;;  %v111_v6 = vpop.f32.mrf.mxu0  ;;  %v286_v10 = vrot.slane %v126_v0, 4  ;;  %v285_v17 = vsel %vm148_vm1, %v284_v8, %v126_v0  ;;  %v184_v33 = vrot.slane %v141_v1, 4 }
  0xa3   :  { %v147_v13 = vrot.slane %v111_v6, 4  ;;  %v151_v14 = vsel %vm148_vm1, %v111_v6, %v150_v60  ;;  %v951_v16 = vperm.slane %v321_v5, %v920_v48  ;;  %v358_v29 = vrot.slane %v944_v11, 4 }
  0xa4   :  { %v159_v19 = vperm.slane %v151_v14, %v912_v30  ;;  %v287_v26 = vsel %vm148_vm1, %v138_v35, %v286_v10  ;;  %v370_v31 = vrot.slane %v947_v12, 4  ;;  %v291_v32 = vperm.slane %v285_v17, %v912_v30 }
  0xa5   :  { %v149_v24 = vsel %vm148_vm1, %v147_v13, %v908_v18  ;;  %v366_v34 = vrot.slane %v951_v16, 4  ;;  %v295_v35 = vperm.slane %v287_v26, %v912_v30 }
  0xa6   :  { %v155_v27 = vperm.slane %v149_v24, %v912_v30  ;;  %v210_v28 = vrot.slane %v159_v19, 4  ;;  %v334_v47 = vrot.slane %v291_v32, 4  ;;  %v209_v50 = vsel %vm148_vm1, %v208_v21, %v159_v19 }
  0xa7   :  { %v215_v60 = vperm.slane %v209_v50, %v920_v48 }
  0xa8   :  { %v197_v36 = vsel %vm148_vm1, %v196_v15, %v155_v27  ;;  %v198_v37 = vrot.slane %v155_v27, 4  ;;  %v211_v18 = vsel %vm148_vm1, %v171_v2, %v210_v28 }
  0xa9   :  { %v129_v38 = vpop.f32.mrf.mxu2  ;;  %v144_v39 = vpop.f32.mrf.mxu3  ;;  %v203_v40 = vperm.slane %v197_v36, %v920_v48  ;;  %v219_v41 = vperm.slane %v211_v18, %v920_v48  ;;  %v254_v26 = vrot.slane %v215_v60, 4 }
  0xaa   :  { %v185_v42 = vsel %vm148_vm1, %v184_v33, %v129_v38  ;;  %v199_v43 = vsel %vm148_vm1, %v167_v61, %v198_v37  ;;  %v186_v44 = vrot.slane %v129_v38, 4  ;;  %v296_v46 = vrot.slane %v144_v39, 4 }
  0xab   :  { %v191_v45 = vperm.slane %v185_v42, %v912_v30  ;;  %v207_v49 = vperm.slane %v199_v43, %v920_v48  ;;  %v299_v51 = vsel %vm148_vm1, %v144_v39, %v298_v7  ;;  %v246_v61 = vrot.slane %v203_v40, 4 }
  0xac   :  { %v187_v52 = vsel %vm148_vm1, %v141_v1, %v186_v44  ;;  %v297_v55 = vsel %vm148_vm1, %v296_v46, %v910_v20  ;;  %v258_v62 = vrot.slane %v219_v41, 4  ;;  %v307_v7 = vperm.slane %v299_v51, %v912_v30 }
  0xad   :  { %v220_v53 = vrot.slane %v191_v45, 4  ;;  %v223_v54 = vsel %vm148_vm1, %v191_v45, %v222_v22  ;;  %v250_v56 = vrot.slane %v207_v49, 4  ;;  %v195_v57 = vperm.slane %v187_v52, %v912_v30 }
  0xae   :  { %v231_v58 = vperm.slane %v223_v54, %v920_v48  ;;  %v303_v59 = vperm.slane %v297_v55, %v912_v30  ;;  %v346_v22 = vrot.slane %v295_v35, 4  ;;  %v344_v42 = vrot.slane %v307_v7, 4 }
  0xaf   :  { %v221_v63 = vsel %vm148_vm1, %v220_v53, %v179_v3  ;;  %v232_v1 = vrot.slane %v195_v57, 4  ;;  %v235_v2 = vsel %vm148_vm1, %v195_v57, %v234_v23 }
  0xb0   :  { %v227_v0 = vperm.slane %v221_v63, %v920_v48  ;;  %v248_v5 = vrot.slane %v231_v58, 4  ;;  %v243_v20 = vperm.slane %v235_v2, %v920_v48  ;;  %v251_v6 = vsel %vm148_vm1, %v231_v58, %v250_v56 }
  0xb1   :  { %v332_v8 = vrot.slane %v303_v59, 4  ;;  %v233_v10 = vsel %vm148_vm1, %v232_v1, %v936_v4  ;;  %v335_v21 = vsel %vm148_vm1, %v303_v59, %v334_v47  ;;  %v384_v24 = vrot.slane %v251_v6, 4 }
  0xb2   :  { %v244_v13 = vrot.slane %v227_v0, 4  ;;  %v247_v14 = vsel %vm148_vm1, %v227_v0, %v246_v61  ;;  %v994_v3 = vsel %vm148_vm1, %v248_v5, %v207_v49  ;;  %v239_v15 = vperm.slane %v233_v10, %v920_v48 }
  0xb3   :  { %v256_v17 = vrot.slane %v243_v20, 4  ;;  %v998_v19 = vsel %vm148_vm1, %v243_v20, %v258_v62  ;;  %v386_v4 = vrot.slane %v247_v14, 4  ;;  %v372_v28 = vrot.slane %v994_v3, 4 }
  0xb4   :  { %v1002_v23 = vsel %vm148_vm1, %v244_v13, %v203_v40  ;;  %v252_v27 = vrot.slane %v239_v15, 4  ;;  %v333_v33 = vsel %vm148_vm1, %v332_v8, %v291_v32  ;;  %v408_v37 = vrot.slane %v998_v19, 4 }
  0xb5   :  { %v387_v36 = vsel %vm148_vm1, %v251_v6, %v386_v4  ;;  %v339_v18 = vperm.slane %v333_v33, %v920_v48  ;;  %v343_v38 = vperm.slane %v335_v21, %v920_v48  ;;  %v257_v39 = vsel %vm148_vm1, %v256_v17, %v219_v41 }
  0xb6   :  { %v374_v40 = vrot.slane %v1002_v23, 4  ;;  %v347_v43 = vsel %vm148_vm1, %v307_v7, %v346_v22  ;;  %v385_v44 = vsel %vm148_vm1, %v384_v24, %v247_v14  ;;  %v1015_v45 = vperm.slane %v387_v36, %v912_v30 }
  0xb7   :  { %v355_v32 = vperm.slane %v347_v43, %v920_v48  ;;  %v360_v46 = vrot.slane %v343_v38, 4  ;;  %v345_v47 = vsel %vm148_vm1, %v344_v42, %v295_v35  ;;  %v356_v49 = vrot.slane %v339_v18, 4 }
  0xb8   :  { %v363_v41 = vsel %vm148_vm1, %v343_v38, %v362_v25  ;;  %v253_v50 = vsel %vm148_vm1, %v252_v27, %v215_v60  ;;  %v351_v51 = vperm.slane %v345_v47, %v920_v48  ;;  %v359_v52 = vsel %vm148_vm1, %v339_v18, %v358_v29 }
  0xb9   :  { %v361_v53 = vsel %vm148_vm1, %v360_v46, %v941_v9  ;;  %v368_v54 = vrot.slane %v355_v32, 4  ;;  %v371_v35 = vsel %vm148_vm1, %v355_v32, %v370_v31  ;;  %v496_v56 = vrot.slane %v363_v41, 4 }
  0xba   :  { %v484_v55 = vrot.slane %v361_v53, 4  ;;  %v255_v25 = vsel %vm148_vm1, %v239_v15, %v254_v26  ;;  %v364_v57 = vrot.slane %v351_v51, 4  ;;  %v367_v58 = vsel %vm148_vm1, %v351_v51, %v366_v34 }
  0xbb   :  { %v369_v29 = vsel %vm148_vm1, %v368_v54, %v947_v12  ;;  %v373_v9 = vsel %vm148_vm1, %v372_v28, %v1002_v23  ;;  %v498_v59 = vrot.slane %v359_v52, 4  ;;  %v357_v60 = vsel %vm148_vm1, %v356_v49, %v944_v11 }
  0xbc   :  { %v1043_v31 = vperm.slane %v373_v9, %v912_v30  ;;  %v1046_v61 = vperm.slane %v385_v44, %v912_v30  ;;  %v508_v62 = vrot.slane %v369_v29, 4  ;;  %v520_v63 = vrot.slane %v371_v35, 4 }
  0xbd   :  { %v396_v0 = vrot.slane %v257_v39, 4  ;;  %v409_v34 = vsel %vm148_vm1, %v408_v37, %v255_v25  ;;  %v522_v1 = vrot.slane %v367_v58, 4  ;;  %v365_v12 = vsel %vm148_vm1, %v364_v57, %v951_v16 }
  0xbe   :  { %v1052_v2 = vperm.slane %v409_v34, %v912_v30  ;;  %v420_v11 = vrot.slane %v1046_v61, 4  ;;  %v398_v20 = vrot.slane %v253_v50, 4  ;;  %v485_v6 = vsel %vm148_vm1, %v484_v55, %v357_v60 }
  0xbf   :  { %v397_v5 = vsel %vm148_vm1, %v396_v0, %v253_v50  ;;  %v497_v7 = vsel %vm148_vm1, %v496_v56, %v359_v52  ;;  %v410_v10 = vrot.slane %v255_v25, 4  ;;  %v491_v15 = vperm.slane %v485_v6, %v912_v30 }
  0xc0   :  { %v403_v8 = vperm.slane %v397_v5, %v912_v30  ;;  %v421_v13 = vsel %vm148_vm1, %v420_v11, %v1043_v31  ;;  %v444_v16 = vrot.slane %v1052_v2, 4  ;;  %v503_v17 = vperm.slane %v497_v7, %v912_v30 }
  0xc1   :  { %v1063_v14 = vperm.slane %v421_v13, %v920_v48  ;;  %v509_v21 = vsel %vm148_vm1, %v508_v62, %v365_v12  ;;  %v486_v23 = vrot.slane %v357_v60, 4  ;;  %v521_v24 = vsel %vm148_vm1, %v520_v63, %v367_v58 }
  0xc2   :  { %v445_v22 = vsel %vm148_vm1, %v444_v16, %v403_v8  ;;  %v375_v4 = vsel %vm148_vm1, %v994_v3, %v374_v40  ;;  %v510_v26 = vrot.slane %v365_v12, 4  ;;  %v1073_v27 = vperm.slane %v509_v21, %v912_v30 }
  0xc3   :  { %v1076_v28 = vperm.slane %v521_v24, %v912_v30  ;;  %v532_v33 = vrot.slane %v503_v17, 4  ;;  %v1079_v36 = vperm.slane %v375_v4, %v912_v30  ;;  %v399_v37 = vsel %vm148_vm1, %v257_v39, %v398_v20 }
  0xc4   :  { %v411_v18 = vsel %vm148_vm1, %v998_v19, %v410_v10  ;;  %v432_v38 = vrot.slane %v1015_v45, 4  ;;  %v1086_v3 = vperm.slane %v445_v22, %v920_v48  ;;  %v470_v40 = vrot.slane %v1063_v14, 4 }
  0xc5   :  { %v533_v42 = vsel %vm148_vm1, %v532_v33, %v491_v15  ;;  %v556_v43 = vrot.slane %v1076_v28, 4  ;;  %v407_v32 = vperm.slane %v399_v37, %v912_v30  ;;  %v419_v39 = vperm.slane %v411_v18, %v912_v30 }
  0xc6   :  { %v1092_v44 = vperm.slane %v533_v42, %v920_v48  ;;  %v433_v19 = vsel %vm148_vm1, %v432_v38, %v1079_v36  ;;  %v523_v46 = vsel %vm148_vm1, %v371_v35, %v522_v1  ;;  %v487_v49 = vsel %vm148_vm1, %v361_v53, %v486_v23 }
  0xc7   :  { %v557_v47 = vsel %vm148_vm1, %v556_v43, %v1073_v27  ;;  %v499_v50 = vsel %vm148_vm1, %v363_v41, %v498_v59  ;;  %v1108_v54 = vperm.slane %v433_v19, %v920_v48  ;;  %v456_v55 = vrot.slane %v419_v39, 4 }
  0xc8   :  { %v1104_v51 = vperm.slane %v557_v47, %v920_v48  ;;  %v582_v52 = vrot.slane %v1092_v44, 4  ;;  %v495_v56 = vperm.slane %v487_v49, %v912_v30  ;;  %v507_v35 = vperm.slane %v499_v50, %v912_v30 }
  0xc9   :  { %v511_v25 = vsel %vm148_vm1, %v369_v29, %v510_v26  ;;  %v471_v53 = vsel %vm148_vm1, %v1086_v3, %v470_v40  ;;  %v457_v57 = vsel %vm148_vm1, %v456_v55, %v407_v32  ;;  %v458_v59 = vrot.slane %v407_v32, 4 }
  0xca   :  { %v583_v41 = vsel %vm148_vm1, %v1104_v51, %v582_v52  ;;  %v519_v58 = vperm.slane %v511_v25, %v912_v30  ;;  %v531_v60 = vperm.slane %v523_v46, %v912_v30  ;;  %v544_v62 = vrot.slane %v507_v35, 4 }
  0xcb   :  { %v747_v9 = vpack.i.bf16 %v471_v53, %v583_v41  ;;  %v478_v63 = vrot.slane %v1108_v54, 4  ;;  %v422_v0 = vrot.slane %v1043_v31, 4  ;;  %v446_v29 = vrot.slane %v403_v8, 4 }
  0xcc   :  { %v534_v34 = vrot.slane %v491_v15, 4  ;;  %v463_v1 = vperm.slane %v457_v57, %v920_v48  ;;  %v545_v12 = vsel %vm148_vm1, %v544_v62, %v495_v56  ;;  %v568_v11 = vrot.slane %v531_v60, 4 }
  0xcd   :  { %748 = vrot.lane.b32.xlu0 %v747_v9, %s810_s2  ;;  %v570_v5 = vrot.slane %v519_v58, 4  ;;  %v551_v20 = vperm.slane %v545_v12, %v920_v48  ;;  %v423_v30 = vsel %vm148_vm1, %v1046_v61, %v422_v0  ;;  %v447_v6 = vsel %vm148_vm1, %v1052_v2, %v446_v29 }
  0xce   :  { %v535_v31 = vsel %vm148_vm1, %v503_v17, %v534_v34  ;;  %v569_v7 = vsel %vm148_vm1, %v568_v11, %v519_v58  ;;  %v431_v8 = vperm.slane %v423_v30, %v920_v48  ;;  %v455_v10 = vperm.slane %v447_v6, %v920_v48 }
  0xcf   :  { %v543_v13 = vperm.slane %v535_v31, %v920_v48  ;;  %v575_v16 = vperm.slane %v569_v7, %v920_v48  ;;  %v590_v15 = vrot.slane %v551_v20, 4  ;;  %v558_v21 = vrot.slane %v1073_v27, 4 }
  0xd0   :  { %v434_v61 = vrot.slane %v1079_v36, 4  ;;  %v472_v22 = vrot.slane %v455_v10, 4  ;;  %v474_v23 = vrot.slane %v431_v8, 4  ;;  %v459_v17 = vsel %vm148_vm1, %v419_v39, %v458_v59 }
  0xd1   :  { %v586_v2 = vrot.slane %v543_v13, 4  ;;  %v468_v24 = vrot.slane %v1086_v3, 4  ;;  %v479_v4 = vsel %vm148_vm1, %v463_v1, %v478_v63  ;;  %v591_v26 = vsel %vm148_vm1, %v575_v16, %v590_v15 }
  0xd2   :  { %v559_v33 = vsel %vm148_vm1, %v1076_v28, %v558_v21  ;;  %v580_v37 = vrot.slane %v1104_v51, 4  ;;  %v767_v18 = vpack.i.bf16 %v479_v4, %v591_v26  ;;  %v435_v36 = vsel %vm148_vm1, %v1015_v45, %v434_v61 }
  0xd3   :  { %v567_v27 = vperm.slane %v559_v33, %v920_v48  ;;  %v475_v38 = vsel %vm148_vm1, %v455_v10, %v474_v23  ;;  %v467_v40 = vperm.slane %v459_v17, %v920_v48  ;;  %v546_v3 = vrot.slane %v495_v56, 4 }
  0xd4   :  { %v571_v42 = vsel %vm148_vm1, %v531_v60, %v570_v5  ;;  %768 = vrot.lane.b32.xlu2 %v767_v18, %s811_s20  ;;  %v473_v32 = vsel %vm148_vm1, %v472_v22, %v431_v8  ;;  %v443_v46 = vperm.slane %v435_v36, %v920_v48  ;;  %v476_v49 = vrot.slane %v463_v1, 4 }
  0xd5   :  { %v584_v43 = vrot.slane %v567_v27, 4  ;;  %v587_v28 = vsel %vm148_vm1, %v567_v27, %v586_v2  ;;  %v579_v39 = vperm.slane %v571_v42, %v920_v48  ;;  %v480_v45 = vrot.slane %v467_v40, 4 }
  0xd6   :  { %v757_v19 = vpack.i.bf16 %v475_v38, %v587_v28  ;;  %v547_v47 = vsel %vm148_vm1, %v507_v35, %v546_v3  ;;  %v581_v25 = vsel %vm148_vm1, %v580_v37, %v1092_v44  ;;  %v588_v53 = vrot.slane %v575_v16, 4 }
  0xd7   :  { %v585_v50 = vsel %vm148_vm1, %v584_v43, %v543_v13  ;;  %v555_v51 = vperm.slane %v547_v47, %v920_v48  ;;  %v592_v52 = vrot.slane %v579_v39, 4  ;;  %v481_v56 = vsel %vm148_vm1, %v480_v45, %v443_v46 }
  0xd8   :  { %758 = vrot.lane.b32.xlu1 %v757_v19, %s812_s21  ;;  %v752_v55 = vpack.i.bf16 %v473_v32, %v585_v50  ;;  %v469_v57 = vsel %vm148_vm1, %v468_v24, %v1063_v14  ;;  %v477_v48 = vsel %vm148_vm1, %v476_v49, %v1108_v54  ;;  %v482_v9 = vrot.slane %v443_v46, 4 }
  0xd9   :  { %v594_v41 = vrot.slane %v555_v51, 4  ;;  %v593_v35 = vsel %vm148_vm1, %v592_v52, %v555_v51  ;;  %v589_v59 = vsel %vm148_vm1, %v588_v53, %v551_v20 }
  0xda   :  { %753 = vrot.lane.b32.xlu0 %v752_v55, %s813_s1  ;;  %v772_v58 = vpack.i.bf16 %v481_v56, %v593_v35  ;;  %v762_v60 = vpack.i.bf16 %v477_v48, %v589_v59  ;;  %v483_v62 = vsel %vm148_vm1, %v467_v40, %v482_v9  ;;  %v672_v40 = vld [vmem:[%s1177_s0] sm:$0xff] }
  0xdb   :  { %v595_v44 = vsel %vm148_vm1, %v579_v39, %v594_v41 }
  0xdc   :  { %773 = vrot.lane.b32.xlu2 %v772_v58, %s814_s22  ;;  %v777_v14 = vpack.i.bf16 %v483_v62, %v595_v44 }
  0xe0   :  { %763 = vrot.lane.b32.xlu1 %v762_v60, %s815_s23 }
  0xe2   :  { %778 = vrot.lane.b32.xlu0 %v777_v14, %s816_s24 }
 0x12e   :  { %v769_v0 = vpop.permute.xlu2 %768 }
 0x12f   :  { %v771_v61 = vunpack.i.h.bf16 %v769_v0  ;;  %v770_v22 = vunpack.i.l.bf16 %v769_v0 }
 0x136   :  { %v774_v8 = vpop.permute.xlu2 %773 }
 0x137   :  { %v775_v2 = vunpack.i.l.bf16 %v774_v8  ;;  %v776_v18 = vunpack.i.h.bf16 %v774_v8 }
 0x13f   :  { %v749_v63 = vpop.permute.xlu0 %748 }
 0x140   :  { %v751_v29 = vunpack.i.h.bf16 %v749_v63  ;;  %v750_v34 = vunpack.i.l.bf16 %v749_v63 }
 0x142   :  { %v653_v5 = vsel %vm652_vm2, %v469_v57, %v751_v29  ;;  %v654_v20 = vsel %vm652_vm2, %v581_v25, %v750_v34 }
 0x14a   :  { %v759_v54 = vpop.permute.xlu1 %758 }
 0x14b   :  { %v761_v31 = vunpack.i.h.bf16 %v759_v54  ;;  %v760_v7 = vunpack.i.l.bf16 %v759_v54 }
 0x14c   :  { %v754_v1 = vpop.permute.xlu0 %753 }
 0x14d   :  { %v756_v12 = vunpack.i.h.bf16 %v754_v1  ;;  %v755_v11 = vunpack.i.l.bf16 %v754_v1 }
 0x14f   :  { %v655_v30 = vsel %vm33_vm0, %v653_v5, %v756_v12  ;;  %v656_v6 = vsel %vm33_vm0, %v654_v20, %v755_v11 }
 0x150   :  { %v658_v13 = vsel %vm657_vm3, %v655_v30, %v761_v31  ;;  %v659_v16 = vsel %vm657_vm3, %v656_v6, %v760_v7 }
 0x152   :  { %v764_v10 = vpop.permute.xlu1 %763 }
 0x153   :  { %v766_v15 = vunpack.i.h.bf16 %v764_v10  ;;  %v765_v21 = vunpack.i.l.bf16 %v764_v10 }
 0x154   :  { %v779_v23 = vpop.permute.xlu0 %778 }
 0x155   :  { %v661_v17 = vsel %vm660_vm4, %v658_v13, %v766_v15  ;;  %v662_v24 = vsel %vm660_vm4, %v659_v16, %v765_v21  ;;  %v780_v4 = vunpack.i.l.bf16 %v779_v23  ;;  %v781_v26 = vunpack.i.h.bf16 %v779_v23 }
 0x156   :  { %v665_v33 = vsel %vm663_vm5, %v662_v24, %v770_v22  ;;  %v664_v37 = vsel %vm663_vm5, %v661_v17, %v771_v61 }
 0x157   :  { %v668_v27 = vsel %vm666_vm6, %v665_v33, %v775_v2  ;;  %v667_v38 = vsel %vm666_vm6, %v664_v37, %v776_v18 }
 0x158   :  { %v671_v36 = vsel %vm669_vm7, %v668_v27, %v780_v4  ;;  %v670_v3 = vsel %vm669_vm7, %v667_v38, %v781_v26 }
 0x159   :  { %690 = vmatpush.msrb.mxu1 %v671_v36 }
 0x15b   :  { %691 = vmatpush.msrb.mxu1 %v670_v3 }
 0x15c   :  { %730 = vmatmul.msk.f32.vlgmr.msrb.gmra.mxu1 %vm33_vm0, %v672_v40 }
 0x1d9   :  { %v693_v42 = vpop.f32.mrf.mxu1 }
 0x1da   :  { %697 = vst.msk [vmem:[#allocation2] sm:$0xff] %vm696_vm8, %v693_v42 }
 0x1db   :  { %708 = dma.vmem_to_hbm [thread:$0]  %s704_s28, 128, %s706_s4, [#allocation3]  }
 0x1dc   :  { %806 = dma.done.wait [#allocation3], 128  }
 0x1dd   :  { %807 = vsyncadd [#allocation3], 4294967168 }
 0x1de   :  { %713 = vsyncpa [#allocation3], 1 }

</bundles_post_ra>
